<compile_context>
chip_gen: v6e
topology: v6e:2x2x1
jax: 0.10.0
libtpu: 0.0.40
codegen_flags: <defaults>
</compile_context>

<pallas_src>
import functools

import jax
import jax.numpy as jnp
from jax.experimental import pallas as pl
from jax.experimental.pallas import tpu as pltpu


def _uafm_kernel(x_ref, y_ref, w_ref, b_ref, o_ref, *, H, W):
    """One grid step = `nb` batch elements.

    x_ref, y_ref : (nb, Cin_p, H*W)    VMEM   (Cin_p = Cin rounded up to 8)
    w_ref        : (Cout, 9*Cin_p)     VMEM   folded (BN-scale * conv weight)
    b_ref        : (Cout, 1)           VMEM   folded BN bias
    o_ref        : (nb, Cout, H*W)     VMEM   lane-dense NCHW output
    """
    HW = H * W
    nb = x_ref.shape[0]
    cin = x_ref.shape[1]
    pad = W + 1                                    # covers max |dh*W + dw|

    # Hoisted invariants (built once, reused for every batch element).
    zeros = jnp.zeros((cin, pad), jnp.float32)
    col = jax.lax.broadcasted_iota(jnp.int32, (1, HW), 1) % W
    m_left = col >= 1                              # reading column (w - 1) is valid
    m_right = col <= W - 2                         # reading column (w + 1) is valid
    w2 = w_ref[...]                                # (Cout, 9*Cin_p)
    bias = b_ref[...]                              # (Cout, 1)

    for b in range(nb):                            # nb is small and static
        s = (x_ref[b] + y_ref[b]).astype(jnp.float32)          # (Cin_p, HW)
        # Zero-padded slab: wide[:, pad + q] == s[:, q] for q in [0, HW), else 0.
        wide = jnp.concatenate([zeros, s, zeros], axis=1)       # (Cin_p, HW + 2*pad)

        taps = []
        for dh in (-1, 0, 1):
            for dw in (-1, 0, 1):
                off = dh * W + dw
                # t[:, p] = s[:, p + off] with zero fill outside [0, HW).
                t = jax.lax.slice_in_dim(wide, pad + off, pad + off + HW, axis=1)
                # Mask the row-to-row wrap of the flattened dw shift.
                if dw == -1:
                    t = jnp.where(m_left, t, 0.0)
                elif dw == 1:
                    t = jnp.where(m_right, t, 0.0)
                taps.append(t)
        patches = jnp.concatenate(taps, axis=0)                 # (9*Cin_p, HW)

        # Single K=9*Cin_p matmul on the MXU; output is lane-dense (Cout, HW).
        acc = jnp.dot(w2, patches, preferred_element_type=jnp.float32)
        o_ref[b] = jnp.maximum(acc + bias, 0.0).astype(o_ref.dtype)


def uafm_forward(x_nchw, y_nchw, w_hwio, bn_gamma, bn_beta, bn_mean, bn_var,
                 eps=1e-5):
    """UAFM forward. Inputs/outputs in NCHW (PyTorch convention)."""
    N, Cin, H, W = x_nchw.shape
    Cout = w_hwio.shape[-1]
    HW = H * W
    cin_p = ((Cin + 7) // 8) * 8        # sublane-align the channel axis

    # Fold BatchNorm (inference stats): BN(conv(s)) == conv_{w*scale}(s) + bias.
    scale = bn_gamma / jnp.sqrt(bn_var + eps)                   # (Cout,)
    bias = (bn_beta - bn_mean * scale).reshape(Cout, 1).astype(jnp.float32)
    w_folded = w_hwio * scale[None, None, None, :]              # (3,3,Cin,Cout)
    if cin_p != Cin:
        w_folded = jnp.pad(w_folded, ((0, 0), (0, 0), (0, cin_p - Cin), (0, 0)))
    w2 = w_folded.reshape(9 * cin_p, Cout).T                    # (Cout, 9*Cin_p)
    # TODO(synk): at production channel counts keep w2 / activations in bf16 for
    # full-rate MXU on v6e/v7x; f32 kept here for the tiny demo's accuracy check.
    w2 = w2.astype(jnp.float32)

    # NCHW -> (N, C, H*W): contiguous reshape, spatial lands on the 128-lane axis.
    x = x_nchw.reshape(N, Cin, HW)
    y = y_nchw.reshape(N, Cin, HW)
    if cin_p != Cin:
        x = jnp.pad(x, ((0, 0), (0, cin_p - Cin), (0, 0)))
        y = jnp.pad(y, ((0, 0), (0, cin_p - Cin), (0, 0)))

    # Batch elements per grid step: fuse as many as fit a small VMEM budget so
    # the ~0.35us per-grid-step overhead does not dominate tiny images.
    bytes_per_image = 4 * HW * (2 * cin_p + Cout) * 2   # x + y + out, double-buffered
    budget = 8 * 1024 * 1024
    nb = 1
    for cand in range(1, N + 1):
        if N % cand == 0 and cand * bytes_per_image <= budget:
            nb = cand
    # TODO(synk): for production UAFM shapes (C >= 64, H,W >= 128) add spatial
    # tiling with a 1-row halo instead of whole-image blocks and set
    # vmem_limit_bytes explicitly (v7x only has 64 MiB VMEM).

    kernel = functools.partial(_uafm_kernel, H=H, W=W)
    out = pl.pallas_call(
        kernel,
        out_shape=jax.ShapeDtypeStruct((N, Cout, HW), x_nchw.dtype),
        grid_spec=pltpu.PrefetchScalarGridSpec(
            num_scalar_prefetch=0,
            grid=(N // nb,),
            in_specs=[
                pl.BlockSpec((nb, cin_p, HW), lambda n: (n, 0, 0)),
                pl.BlockSpec((nb, cin_p, HW), lambda n: (n, 0, 0)),
                pl.BlockSpec((Cout, 9 * cin_p), lambda n: (0, 0)),
                pl.BlockSpec((Cout, 1), lambda n: (0, 0)),
            ],
            out_specs=pl.BlockSpec((nb, Cout, HW), lambda n: (n, 0, 0)),
        ),
        compiler_params=pltpu.CompilerParams(
            # batch elements are independent -> shard across both TCs on v7x
            dimension_semantics=("parallel",)),
    )(x, y, w2, bias)

    # (N, Cout, H*W) -> NCHW: contiguous reshape, no transpose needed.
    return out.reshape(N, Cout, H, W)


def uafm_reference(x_nchw, y_nchw, w_hwio, bn_gamma, bn_beta, bn_mean, bn_var,
                   eps=1e-5):
    """Pure-JAX reference for correctness checking."""
    s = jnp.transpose(x_nchw + y_nchw, (0, 2, 3, 1))   # NHWC
    conv = jax.lax.conv_general_dilated(
        s, w_hwio, window_strides=(1, 1), padding="SAME",
        dimension_numbers=("NHWC", "HWIO", "NHWC"))
    scale = bn_gamma / jnp.sqrt(bn_var + eps)
    bias = bn_beta - bn_mean * scale
    out = jnp.maximum(conv * scale.reshape(1, 1, 1, -1)
                      + bias.reshape(1, 1, 1, -1), 0.0)
    return jnp.transpose(out, (0, 3, 1, 2))


if __name__ == "__main__":
    # small shapes consistent with the module: in_ch=4, out_ch=8, 16x16 spatial
    N, Cin, Cout, H, W = 2, 4, 8, 16, 16

    key = jax.random.PRNGKey(0)
    kx, ky, kw, kg, kb, km, kv = jax.random.split(key, 7)

    x = jax.random.normal(kx, (N, Cin, H, W), jnp.float32)
    y = jax.random.normal(ky, (N, Cin, H, W), jnp.float32)

    # deterministic synthetic parameters (shapes from ConvBNReLU(in_ch, out_ch, 3))
    w_hwio = 0.1 * jax.random.normal(kw, (3, 3, Cin, Cout), jnp.float32)
    bn_gamma = 1.0 + 0.1 * jax.random.normal(kg, (Cout,), jnp.float32)
    bn_beta = 0.1 * jax.random.normal(kb, (Cout,), jnp.float32)
    bn_mean = 0.1 * jax.random.normal(km, (Cout,), jnp.float32)
    bn_var = jnp.abs(jax.random.normal(kv, (Cout,), jnp.float32)) + 0.5
    # TODO(synk): PyTorch BatchNorm2d in train mode uses batch statistics; this
    # kernel folds inference (running-stat) BN, the standard deployment form.

    out = jax.block_until_ready(
        uafm_forward(x, y, w_hwio, bn_gamma, bn_beta, bn_mean, bn_var))
    ref = uafm_reference(x, y, w_hwio, bn_gamma, bn_beta, bn_mean, bn_var)

    assert out.shape == (N, Cout, H, W), out.shape
    max_err = float(jnp.max(jnp.abs(out - ref)))
    assert jnp.allclose(out, ref, atol=1e-4, rtol=1e-4), max_err

    print("KERNEL_OK")
</pallas_src>

<mosaic_0001>
module attributes {stable_mosaic.version = 11 : i64} {
  func.func @_uafm_kernel(%arg0: i32, %arg1: memref<2x8x256xf32, #tpu.memory_space<vmem>>, %arg2: memref<2x8x256xf32, #tpu.memory_space<vmem>>, %arg3: memref<8x72xf32, #tpu.memory_space<vmem>>, %arg4: memref<8x1xf32, #tpu.memory_space<vmem>>, %arg5: memref<2x8x256xf32, #tpu.memory_space<vmem>>) attributes {dimension_semantics = [#tpu.dimension_semantics<parallel>], iteration_bounds = array<i64: 1>, scalar_prefetch = 0 : i64, scratch_operands = 0 : i64, tpu.core_type = #tpu.core_type<tc>, window_params = [{transform_indices = @transform_0, window_bounds = array<i64: 2, 8, 256>}, {transform_indices = @transform_1, window_bounds = array<i64: 2, 8, 256>}, {pipeline_mode = #tpu.pipeline_mode<synchronous>, transform_indices = @transform_2, window_bounds = array<i64: 8, 72>}, {pipeline_mode = #tpu.pipeline_mode<synchronous>, transform_indices = @transform_3, window_bounds = array<i64: 8, 1>}, {transform_indices = @transform_4, window_bounds = array<i64: 2, 8, 256>}]} {
    %cst = arith.constant 0.000000e+00 : f32
    %0 = vector.broadcast %cst : f32 to vector<8x17xf32>
    %1 = tpu.iota {dimensions = array<i32: 1>} : vector<1x256xi32>
    %c16_i32 = arith.constant 16 : i32
    %c0_i32 = arith.constant 0 : i32
    %2 = arith.cmpi eq, %c16_i32, %c0_i32 : i32
    %c1_i32 = arith.constant 1 : i32
    %3 = arith.select %2, %c1_i32, %c16_i32 : i32
    %4 = vector.broadcast %3 : i32 to vector<1x256xi32>
    %5 = arith.remsi %1, %4 : vector<1x256xi32>
    %c0_i32_0 = arith.constant 0 : i32
    %6 = vector.broadcast %c0_i32_0 : i32 to vector<1x256xi32>
    %7 = arith.cmpi ne, %5, %6 : vector<1x256xi32>
    %c0_i32_1 = arith.constant 0 : i32
    %8 = vector.broadcast %c0_i32_1 : i32 to vector<1x256xi32>
    %9 = arith.cmpi slt, %5, %8 : vector<1x256xi32>
    %c0_i32_2 = arith.constant 0 : i32
    %10 = arith.cmpi slt, %3, %c0_i32_2 : i32
    %11 = vector.broadcast %10 : i1 to vector<1x256xi1>
    %12 = vector.broadcast %11 : vector<1x256xi1> to vector<1x256xi1>
    %13 = arith.xori %9, %12 : vector<1x256xi1>
    %14 = arith.andi %13, %7 : vector<1x256xi1>
    %15 = vector.broadcast %3 : i32 to vector<1x256xi32>
    %16 = arith.addi %5, %15 : vector<1x256xi32>
    %17 = arith.select %14, %16, %5 : vector<1x256xi1>, vector<1x256xi32>
    %c1_i32_3 = arith.constant 1 : i32
    %18 = vector.broadcast %c1_i32_3 : i32 to vector<1x256xi32>
    %19 = arith.cmpi sge, %17, %18 : vector<1x256xi32>
    %c14_i32 = arith.constant 14 : i32
    %20 = vector.broadcast %c14_i32 : i32 to vector<1x256xi32>
    %21 = arith.cmpi sle, %17, %20 : vector<1x256xi32>
    %c0 = arith.constant 0 : index
    %c0_4 = arith.constant 0 : index
    %22 = vector.load %arg3[%c0, %c0_4] : memref<8x72xf32, #tpu.memory_space<vmem>>, vector<8x72xf32>
    %c0_5 = arith.constant 0 : index
    %c0_6 = arith.constant 0 : index
    %23 = vector.load %arg4[%c0_5, %c0_6] : memref<8x1xf32, #tpu.memory_space<vmem>>, vector<8x1xf32>
    %c0_7 = arith.constant 0 : index
    %c0_8 = arith.constant 0 : index
    %c0_9 = arith.constant 0 : index
    %24 = vector.load %arg1[%c0_7, %c0_8, %c0_9] : memref<2x8x256xf32, #tpu.memory_space<vmem>>, vector<1x8x256xf32>
    %25 = vector.shape_cast %24 : vector<1x8x256xf32> to vector<8x256xf32>
    %c0_10 = arith.constant 0 : index
    %c0_11 = arith.constant 0 : index
    %c0_12 = arith.constant 0 : index
    %26 = vector.load %arg2[%c0_10, %c0_11, %c0_12] : memref<2x8x256xf32, #tpu.memory_space<vmem>>, vector<1x8x256xf32>
    %27 = vector.shape_cast %26 : vector<1x8x256xf32> to vector<8x256xf32>
    %28 = arith.addf %25, %27 : vector<8x256xf32>
    %29 = tpu.concatenate %0, %28, %0 in 1 : vector<8x17xf32>, vector<8x256xf32>, vector<8x17xf32> -> vector<8x290xf32>
    %30 = vector.extract_strided_slice %29 {offsets = [0, 0], sizes = [8, 256], strides = [1, 1]} : vector<8x290xf32> to vector<8x256xf32>
    %cst_13 = arith.constant 0.000000e+00 : f32
    %31 = vector.shape_cast %19 : vector<1x256xi1> to vector<1x256xi1>
    %32 = vector.broadcast %31 : vector<1x256xi1> to vector<8x256xi1>
    %33 = vector.broadcast %cst_13 : f32 to vector<8x256xf32>
    %34 = arith.select %32, %30, %33 : vector<8x256xi1>, vector<8x256xf32>
    %35 = vector.extract_strided_slice %29 {offsets = [0, 1], sizes = [8, 256], strides = [1, 1]} : vector<8x290xf32> to vector<8x256xf32>
    %36 = vector.extract_strided_slice %29 {offsets = [0, 2], sizes = [8, 256], strides = [1, 1]} : vector<8x290xf32> to vector<8x256xf32>
    %cst_14 = arith.constant 0.000000e+00 : f32
    %37 = vector.shape_cast %21 : vector<1x256xi1> to vector<1x256xi1>
    %38 = vector.broadcast %37 : vector<1x256xi1> to vector<8x256xi1>
    %39 = vector.broadcast %cst_14 : f32 to vector<8x256xf32>
    %40 = arith.select %38, %36, %39 : vector<8x256xi1>, vector<8x256xf32>
    %41 = vector.extract_strided_slice %29 {offsets = [0, 16], sizes = [8, 256], strides = [1, 1]} : vector<8x290xf32> to vector<8x256xf32>
    %cst_15 = arith.constant 0.000000e+00 : f32
    %42 = vector.shape_cast %19 : vector<1x256xi1> to vector<1x256xi1>
    %43 = vector.broadcast %42 : vector<1x256xi1> to vector<8x256xi1>
    %44 = vector.broadcast %cst_15 : f32 to vector<8x256xf32>
    %45 = arith.select %43, %41, %44 : vector<8x256xi1>, vector<8x256xf32>
    %46 = vector.extract_strided_slice %29 {offsets = [0, 17], sizes = [8, 256], strides = [1, 1]} : vector<8x290xf32> to vector<8x256xf32>
    %47 = vector.extract_strided_slice %29 {offsets = [0, 18], sizes = [8, 256], strides = [1, 1]} : vector<8x290xf32> to vector<8x256xf32>
    %cst_16 = arith.constant 0.000000e+00 : f32
    %48 = vector.shape_cast %21 : vector<1x256xi1> to vector<1x256xi1>
    %49 = vector.broadcast %48 : vector<1x256xi1> to vector<8x256xi1>
    %50 = vector.broadcast %cst_16 : f32 to vector<8x256xf32>
    %51 = arith.select %49, %47, %50 : vector<8x256xi1>, vector<8x256xf32>
    %52 = vector.extract_strided_slice %29 {offsets = [0, 32], sizes = [8, 256], strides = [1, 1]} : vector<8x290xf32> to vector<8x256xf32>
    %cst_17 = arith.constant 0.000000e+00 : f32
    %53 = vector.shape_cast %19 : vector<1x256xi1> to vector<1x256xi1>
    %54 = vector.broadcast %53 : vector<1x256xi1> to vector<8x256xi1>
    %55 = vector.broadcast %cst_17 : f32 to vector<8x256xf32>
    %56 = arith.select %54, %52, %55 : vector<8x256xi1>, vector<8x256xf32>
    %57 = vector.extract_strided_slice %29 {offsets = [0, 33], sizes = [8, 256], strides = [1, 1]} : vector<8x290xf32> to vector<8x256xf32>
    %58 = vector.extract_strided_slice %29 {offsets = [0, 34], sizes = [8, 256], strides = [1, 1]} : vector<8x290xf32> to vector<8x256xf32>
    %cst_18 = arith.constant 0.000000e+00 : f32
    %59 = vector.shape_cast %21 : vector<1x256xi1> to vector<1x256xi1>
    %60 = vector.broadcast %59 : vector<1x256xi1> to vector<8x256xi1>
    %61 = vector.broadcast %cst_18 : f32 to vector<8x256xf32>
    %62 = arith.select %60, %58, %61 : vector<8x256xi1>, vector<8x256xf32>
    %63 = tpu.concatenate %34, %35, %40, %45, %46, %51, %56, %57, %62 in 0 : vector<8x256xf32>, vector<8x256xf32>, vector<8x256xf32>, vector<8x256xf32>, vector<8x256xf32>, vector<8x256xf32>, vector<8x256xf32>, vector<8x256xf32>, vector<8x256xf32> -> vector<72x256xf32>
    %cst_19 = arith.constant dense<0.000000e+00> : vector<8x256xf32>
    %64 = tpu.matmul %22, %63, %cst_19 {dimension_numbers = #tpu.dot_dimension_numbers<[1], [0], [0], [1], [0, 0, 1, 1], [], []>} : vector<8x72xf32>, vector<72x256xf32>, vector<8x256xf32> -> vector<8x256xf32>
    %65 = vector.broadcast %23 : vector<8x1xf32> to vector<8x256xf32>
    %66 = arith.addf %64, %65 : vector<8x256xf32>
    %cst_20 = arith.constant 0.000000e+00 : f32
    %67 = vector.broadcast %cst_20 : f32 to vector<8x256xf32>
    %68 = arith.maximumf %66, %67 : vector<8x256xf32>
    %c0_21 = arith.constant 0 : index
    %c0_22 = arith.constant 0 : index
    %c0_23 = arith.constant 0 : index
    %69 = vector.load %arg5[%c0_21, %c0_22, %c0_23] : memref<2x8x256xf32, #tpu.memory_space<vmem>>, vector<1x8x256xf32>
    %70 = vector.shape_cast %69 : vector<1x8x256xf32> to vector<8x256xf32>
    %71 = vector.shape_cast %68 : vector<8x256xf32> to vector<1x8x256xf32>
    tpu.vector_store %arg5[%c0_21, %c0_22, %c0_23], %71 {strides = array<i32>} : memref<2x8x256xf32, #tpu.memory_space<vmem>>, vector<1x8x256xf32>,
    %c1 = arith.constant 1 : index
    %c0_24 = arith.constant 0 : index
    %c0_25 = arith.constant 0 : index
    %72 = vector.load %arg1[%c1, %c0_24, %c0_25] : memref<2x8x256xf32, #tpu.memory_space<vmem>>, vector<1x8x256xf32>
    %73 = vector.shape_cast %72 : vector<1x8x256xf32> to vector<8x256xf32>
    %c1_26 = arith.constant 1 : index
    %c0_27 = arith.constant 0 : index
    %c0_28 = arith.constant 0 : index
    %74 = vector.load %arg2[%c1_26, %c0_27, %c0_28] : memref<2x8x256xf32, #tpu.memory_space<vmem>>, vector<1x8x256xf32>
    %75 = vector.shape_cast %74 : vector<1x8x256xf32> to vector<8x256xf32>
    %76 = arith.addf %73, %75 : vector<8x256xf32>
    %77 = tpu.concatenate %0, %76, %0 in 1 : vector<8x17xf32>, vector<8x256xf32>, vector<8x17xf32> -> vector<8x290xf32>
    %78 = vector.extract_strided_slice %77 {offsets = [0, 0], sizes = [8, 256], strides = [1, 1]} : vector<8x290xf32> to vector<8x256xf32>
    %cst_29 = arith.constant 0.000000e+00 : f32
    %79 = vector.shape_cast %19 : vector<1x256xi1> to vector<1x256xi1>
    %80 = vector.broadcast %79 : vector<1x256xi1> to vector<8x256xi1>
    %81 = vector.broadcast %cst_29 : f32 to vector<8x256xf32>
    %82 = arith.select %80, %78, %81 : vector<8x256xi1>, vector<8x256xf32>
    %83 = vector.extract_strided_slice %77 {offsets = [0, 1], sizes = [8, 256], strides = [1, 1]} : vector<8x290xf32> to vector<8x256xf32>
    %84 = vector.extract_strided_slice %77 {offsets = [0, 2], sizes = [8, 256], strides = [1, 1]} : vector<8x290xf32> to vector<8x256xf32>
    %cst_30 = arith.constant 0.000000e+00 : f32
    %85 = vector.shape_cast %21 : vector<1x256xi1> to vector<1x256xi1>
    %86 = vector.broadcast %85 : vector<1x256xi1> to vector<8x256xi1>
    %87 = vector.broadcast %cst_30 : f32 to vector<8x256xf32>
    %88 = arith.select %86, %84, %87 : vector<8x256xi1>, vector<8x256xf32>
    %89 = vector.extract_strided_slice %77 {offsets = [0, 16], sizes = [8, 256], strides = [1, 1]} : vector<8x290xf32> to vector<8x256xf32>
    %cst_31 = arith.constant 0.000000e+00 : f32
    %90 = vector.shape_cast %19 : vector<1x256xi1> to vector<1x256xi1>
    %91 = vector.broadcast %90 : vector<1x256xi1> to vector<8x256xi1>
    %92 = vector.broadcast %cst_31 : f32 to vector<8x256xf32>
    %93 = arith.select %91, %89, %92 : vector<8x256xi1>, vector<8x256xf32>
    %94 = vector.extract_strided_slice %77 {offsets = [0, 17], sizes = [8, 256], strides = [1, 1]} : vector<8x290xf32> to vector<8x256xf32>
    %95 = vector.extract_strided_slice %77 {offsets = [0, 18], sizes = [8, 256], strides = [1, 1]} : vector<8x290xf32> to vector<8x256xf32>
    %cst_32 = arith.constant 0.000000e+00 : f32
    %96 = vector.shape_cast %21 : vector<1x256xi1> to vector<1x256xi1>
    %97 = vector.broadcast %96 : vector<1x256xi1> to vector<8x256xi1>
    %98 = vector.broadcast %cst_32 : f32 to vector<8x256xf32>
    %99 = arith.select %97, %95, %98 : vector<8x256xi1>, vector<8x256xf32>
    %100 = vector.extract_strided_slice %77 {offsets = [0, 32], sizes = [8, 256], strides = [1, 1]} : vector<8x290xf32> to vector<8x256xf32>
    %cst_33 = arith.constant 0.000000e+00 : f32
    %101 = vector.shape_cast %19 : vector<1x256xi1> to vector<1x256xi1>
    %102 = vector.broadcast %101 : vector<1x256xi1> to vector<8x256xi1>
    %103 = vector.broadcast %cst_33 : f32 to vector<8x256xf32>
    %104 = arith.select %102, %100, %103 : vector<8x256xi1>, vector<8x256xf32>
    %105 = vector.extract_strided_slice %77 {offsets = [0, 33], sizes = [8, 256], strides = [1, 1]} : vector<8x290xf32> to vector<8x256xf32>
    %106 = vector.extract_strided_slice %77 {offsets = [0, 34], sizes = [8, 256], strides = [1, 1]} : vector<8x290xf32> to vector<8x256xf32>
    %cst_34 = arith.constant 0.000000e+00 : f32
    %107 = vector.shape_cast %21 : vector<1x256xi1> to vector<1x256xi1>
    %108 = vector.broadcast %107 : vector<1x256xi1> to vector<8x256xi1>
    %109 = vector.broadcast %cst_34 : f32 to vector<8x256xf32>
    %110 = arith.select %108, %106, %109 : vector<8x256xi1>, vector<8x256xf32>
    %111 = tpu.concatenate %82, %83, %88, %93, %94, %99, %104, %105, %110 in 0 : vector<8x256xf32>, vector<8x256xf32>, vector<8x256xf32>, vector<8x256xf32>, vector<8x256xf32>, vector<8x256xf32>, vector<8x256xf32>, vector<8x256xf32>, vector<8x256xf32> -> vector<72x256xf32>
    %cst_35 = arith.constant dense<0.000000e+00> : vector<8x256xf32>
    %112 = tpu.matmul %22, %111, %cst_35 {dimension_numbers = #tpu.dot_dimension_numbers<[1], [0], [0], [1], [0, 0, 1, 1], [], []>} : vector<8x72xf32>, vector<72x256xf32>, vector<8x256xf32> -> vector<8x256xf32>
    %113 = vector.broadcast %23 : vector<8x1xf32> to vector<8x256xf32>
    %114 = arith.addf %112, %113 : vector<8x256xf32>
    %cst_36 = arith.constant 0.000000e+00 : f32
    %115 = vector.broadcast %cst_36 : f32 to vector<8x256xf32>
    %116 = arith.maximumf %114, %115 : vector<8x256xf32>
    %c1_37 = arith.constant 1 : index
    %c0_38 = arith.constant 0 : index
    %c0_39 = arith.constant 0 : index
    %117 = vector.load %arg5[%c1_37, %c0_38, %c0_39] : memref<2x8x256xf32, #tpu.memory_space<vmem>>, vector<1x8x256xf32>
    %118 = vector.shape_cast %117 : vector<1x8x256xf32> to vector<8x256xf32>
    %119 = vector.shape_cast %116 : vector<8x256xf32> to vector<1x8x256xf32>
    tpu.vector_store %arg5[%c1_37, %c0_38, %c0_39], %119 {strides = array<i32>} : memref<2x8x256xf32, #tpu.memory_space<vmem>>, vector<1x8x256xf32>,
    return
  }
  func.func @transform_0(%arg0: i32) -> (i32, i32, i32) {
    %c0_i32 = arith.constant 0 : i32
    %c0_i32_0 = arith.constant 0 : i32
    %c0_i32_1 = arith.constant 0 : i32
    return %arg0, %c0_i32, %c0_i32_0 : i32, i32, i32
  }
  func.func @transform_1(%arg0: i32) -> (i32, i32, i32) {
    %c0_i32 = arith.constant 0 : i32
    %c0_i32_0 = arith.constant 0 : i32
    %c0_i32_1 = arith.constant 0 : i32
    return %arg0, %c0_i32, %c0_i32_0 : i32, i32, i32
  }
  func.func @transform_2(%arg0: i32) -> (i32, i32) {
    %c0_i32 = arith.constant 0 : i32
    %c0_i32_0 = arith.constant 0 : i32
    %c0_i32_1 = arith.constant 0 : i32
    return %c0_i32, %c0_i32_0 : i32, i32
  }
  func.func @transform_3(%arg0: i32) -> (i32, i32) {
    %c0_i32 = arith.constant 0 : i32
    %c0_i32_0 = arith.constant 0 : i32
    %c0_i32_1 = arith.constant 0 : i32
    return %c0_i32, %c0_i32_0 : i32, i32
  }
  func.func @transform_4(%arg0: i32) -> (i32, i32, i32) {
    %c0_i32 = arith.constant 0 : i32
    %c0_i32_0 = arith.constant 0 : i32
    %c0_i32_1 = arith.constant 0 : i32
    return %arg0, %c0_i32, %c0_i32_0 : i32, i32, i32
  }
}

</mosaic_0001>

<bundles_post_ra>
// kernel: tpu_custom_call.1
= control target key start
LH: loop header
LB: loop body
LE: loop exit
PB: predicated region body
PF: predicated region fallthrough
CT: control target
= control target key end

     0   :  { %9 = vsyncpa [#allocation3], 0  ;;  %s782_s0 = inlined_call_operand.hbm [shape: f32[2,8,256], index: 0, kind: input, shape index: {}]   ;;  %s783_s1 = inlined_call_operand.hbm [shape: f32[2,8,256], index: 1, kind: input, shape index: {}]   ;;  %s784_s2 = inlined_call_operand.vmem [shape: f32[8,72], index: 2, kind: input, shape index: {}]   ;;  %s785_s3 = inlined_call_operand.vmem [shape: f32[8,1], index: 3, kind: input, shape index: {}]   ;;  %s786_s4 = inlined_call_operand.hbm [shape: f32[2,8,256], index: 4, kind: output, shape index: {}]  }
   0x1   :  { %10 = vsyncpa [#allocation6], 0 }
   0x2   :  { %11 = vsyncpa [#allocation4], 0  ;;  %s609_s15 = smov [#allocation2]  }
   0x3   :  { %s17_s16 = sshll.u32 %s609_s15, 4  ;;  %s18_s16 = int_to_ptr.vmem [resolvable:$true] %s17_s16 }
   0x4   :  { %s551_s17 = scalar_lea.vmem %s18_s16, 512  ;;  %p556_p1 = scmp.lt.s32.totalorder %s18_s16, %s18_s16 }
   0x5   :  { %p552_p0 = scmp.ne.s32.totalorder %s18_s16, %s551_s17  ;;  %p557_p2 = scmp.lt.s32.totalorder %s551_s17, %s551_s17 }
   0x7   :  { %p558_p3 = por %p557_p2, %p556_p1 }
   0x9   :  { %p559_p4 = pnand %p558_p3, %p552_p0 }
   0xb   :  { %562 = shalt.err (!%p559_p4)
}
   0xc   :  { %s610_s18 = smov 256   ;;  %s611_s19 = smov 16  }
   0xd   :  { %23 = dma.hbm_to_vmem [thread:$0]  %s782_s0, 512, %s18_s16, [#allocation3], %s610_s18, %s610_s18, %s611_s19  }
   0xe   :  { %s612_s22 = smov [#allocation5]  }
   0xf   :  { %s29_s23 = sshll.u32 %s612_s22, 4  ;;  %s30_s23 = int_to_ptr.vmem [resolvable:$true] %s29_s23 }
  0x10   :  { %s571_s24 = scalar_lea.vmem %s30_s23, 512  ;;  %p576_p6 = scmp.lt.s32.totalorder %s30_s23, %s30_s23 }
  0x11   :  { %p572_p5 = scmp.ne.s32.totalorder %s30_s23, %s571_s24  ;;  %p577_p7 = scmp.lt.s32.totalorder %s571_s24, %s571_s24 }
  0x13   :  { %p578_p8 = por %p577_p7, %p576_p6 }
  0x15   :  { %p579_p9 = pnand %p578_p8, %p572_p5 }
  0x17   :  { %582 = shalt.err (!%p579_p9)
}
  0x18   :  { %35 = dma.hbm_to_vmem [thread:$0]  %s783_s1, 512, %s30_s23, [#allocation6], %s610_s18, %s610_s18, %s611_s19  }
  0x19   :  { %603 = dma.done.wait [#allocation3], 512  }
  0x1a   :  { %604 = vsyncadd [#allocation3], 4294966784 }
  0x1b   :  { %605 = dma.done.wait [#allocation6], 512  }
  0x1c   :  { %606 = vsyncadd [#allocation6], 4294966784  ;;  %v293_v0 = vld [vmem:[#allocation2 + $0x10] sm:$0xff]  ;;  %v79_v2 = vld [vmem:[#allocation2] sm:$0xff]  ;;  %s613_s0 = smov 17   ;;  %vm91_vm0 = vcmask 138240   ;;  %v46_v25 = vlaneseq }
  0x1d   :  { %v296_v1 = vld [vmem:[#allocation5 + $0x10] sm:$0xff]  ;;  %v81_v4 = vld [vmem:[#allocation5] sm:$0xff]  ;;  %v294_v5 = vld [vmem:[#allocation2 + $0x18] sm:$0xff]  ;;  %s614_s1 = smov 94   ;;  %s615_s27 = smov 95   ;;  %v621_v22 = vmov 0.0  }
  0x1e   :  { %v298_v3 = vadd.f32 %v296_v1, %v293_v0  ;;  %v297_v6 = vld [vmem:[#allocation5 + $0x18] sm:$0xff]  ;;  %v83_v7 = vadd.f32 %v81_v4, %v79_v2  ;;  %v80_v8 = vld [vmem:[#allocation2 + $0x8] sm:$0xff]  ;;  %s616_s28 = smov 96   ;;  %s617_s29 = smov 110   ;;  %281 = vmatprep.mubr.f32.mxu0 %v621_v22  ;;  %470 = vmatprep.mubr.f32.mxu1 %v621_v22  ;;  %v623_v23 = vmov 0   ;;  %v78_v24 = vld [vmem:[%s785_s3] sm:$0xff] }
  0x1f   :  { %v82_v9 = vld [vmem:[#allocation5 + $0x8] sm:$0xff]  ;;  %v299_v10 = vadd.f32 %v297_v6, %v294_v5  ;;  %s618_s30 = smov 111   ;;  %s619_s5 = smov 112   ;;  %542 = vset.pattern.permute.xlu0 %v623_v23  ;;  %v47_v26 = vand.u32 127, %v46_v25  ;;  %vm168_vm1 = vcmask 769024   ;;  %vm203_vm4 = vcmask 777216  }
  0x20   :  { %302 = vrot.lane.b32.xlu1 %v298_v3, %s613_s0  ;;  %87 = vrot.lane.b32.xlu0 %v83_v7, %s613_s0  ;;  %v84_v11 = vadd.f32 %v82_v9, %v80_v8  ;;  %s620_s6 = smov 126   ;;  %s622_s7 = smov 127   ;;  %vm155_vm5 = vcmask 785408   ;;  %vm142_vm8 = vcmask 900096   ;;  %vm192_vm9 = vcmask 908288   ;;  %v77_v37 = vld [vmem:[%s784_s2] sm:$0xff] }
  0x21   :  { %v48_v27 = vadd.s32 128, %v47_v26  ;;  %v53_v33 = vand.u32 15, %v47_v26  ;;  %vm129_vm10 = vcmask 916480   ;;  %vm116_vm11 = vcmask 1031168   ;;  %s624_s2 = smov [#allocation7]  }
  0x22   :  { %vm181_vm12 = vcmask 1039360   ;;  %vm213_vm13 = vcmask 588800   ;;  %s487_s11 = sshll.u32 %s624_s2, 4  ;;  %s488_s11 = int_to_ptr.vmem [resolvable:$true] %s487_s11 }
  0x23   :  { %v60_v28 = vand.u32 15, %v48_v27  ;;  %vm713_vm3 = vcmp.le.s32.totalorder %v53_v33, 14  ;;  %vm729_vm7 = vcmp.ge.s32.totalorder %v53_v33, 1  ;;  %s583_s12 = scalar_lea.vmem %s488_s11, 512  ;;  %p588_p11 = scmp.lt.s32.totalorder %s488_s11, %s488_s11 }
  0x24   :  { %304 = vrot.lane.b32.xlu1 %v299_v10, %s613_s0  ;;  %89 = vrot.lane.b32.xlu0 %v84_v11, %s613_s0  ;;  %p584_p10 = scmp.ne.s32.totalorder %s488_s11, %s583_s12  ;;  %p589_p12 = scmp.lt.s32.totalorder %s583_s12, %s583_s12 }
  0x25   :  { %vm705_vm2 = vcmp.le.s32.totalorder %v60_v28, 14  ;;  %vm721_vm6 = vcmp.ge.s32.totalorder %v60_v28, 1 }
  0x26   :  { %p590_p13 = por %p589_p12, %p588_p11 }
  0x28   :  { %p591_p0 = pnand %p590_p13, %p584_p10 }
  0x92   :  { %v303_v12 = vpop.permute.xlu1 %302  ;;  %v88_v13 = vpop.permute.xlu0 %87 }
  0x93   :  { %v668_v20 = vsel %vm91_vm0, 0.0, %v303_v12  ;;  %v670_v21 = vsel %vm91_vm0, 0.0, %v88_v13 }
  0x96   :  { %v90_v14 = vpop.permute.xlu0 %89  ;;  %v305_v17 = vpop.permute.xlu1 %304 }
  0x97   :  { %v662_v15 = vsel %vm91_vm0, %v88_v13, %v90_v14  ;;  %v97_v16 = vsel %vm91_vm0, %v90_v14, 0.0  ;;  %v311_v18 = vsel %vm91_vm0, %v305_v17, 0.0  ;;  %v665_v19 = vsel %vm91_vm0, %v303_v12, %v305_v17 }
  0x98   :  { %166 = vrot.lane.b32.xlu1 %v97_v16, %s614_s1  ;;  %164 = vrot.lane.b32.xlu0 %v662_v15, %s614_s1 }
  0x9c   :  { %368 = vrot.lane.b32.xlu1 %v311_v18, %s614_s1  ;;  %366 = vrot.lane.b32.xlu0 %v665_v19, %s614_s1 }
  0xa0   :  { %364 = vrot.lane.b32.xlu1 %v668_v20, %s614_s1  ;;  %162 = vrot.lane.b32.xlu0 %v670_v21, %s614_s1 }
  0xa4   :  { %201 = vrot.lane.b32.xlu1 %v97_v16, %s615_s27  ;;  %199 = vrot.lane.b32.xlu0 %v662_v15, %s615_s27 }
  0xa8   :  { %400 = vrot.lane.b32.xlu1 %v311_v18, %s615_s27  ;;  %398 = vrot.lane.b32.xlu0 %v665_v19, %s615_s27 }
  0xac   :  { %396 = vrot.lane.b32.xlu1 %v668_v20, %s615_s27  ;;  %197 = vrot.lane.b32.xlu0 %v670_v21, %s615_s27 }
  0xb0   :  { %153 = vrot.lane.b32.xlu1 %v97_v16, %s616_s28  ;;  %151 = vrot.lane.b32.xlu0 %v662_v15, %s616_s28 }
  0xb4   :  { %356 = vrot.lane.b32.xlu1 %v311_v18, %s616_s28  ;;  %354 = vrot.lane.b32.xlu0 %v665_v19, %s616_s28 }
  0xb8   :  { %352 = vrot.lane.b32.xlu1 %v668_v20, %s616_s28  ;;  %149 = vrot.lane.b32.xlu0 %v670_v21, %s616_s28 }
  0xbc   :  { %140 = vrot.lane.b32.xlu1 %v97_v16, %s617_s29  ;;  %138 = vrot.lane.b32.xlu0 %v662_v15, %s617_s29 }
  0xc0   :  { %344 = vrot.lane.b32.xlu1 %v311_v18, %s617_s29  ;;  %342 = vrot.lane.b32.xlu0 %v665_v19, %s617_s29 }
  0xc4   :  { %340 = vrot.lane.b32.xlu1 %v668_v20, %s617_s29  ;;  %136 = vrot.lane.b32.xlu0 %v670_v21, %s617_s29 }
  0xc8   :  { %190 = vrot.lane.b32.xlu1 %v97_v16, %s618_s30  ;;  %188 = vrot.lane.b32.xlu0 %v662_v15, %s618_s30 }
  0xcc   :  { %390 = vrot.lane.b32.xlu1 %v311_v18, %s618_s30  ;;  %388 = vrot.lane.b32.xlu0 %v665_v19, %s618_s30 }
  0xd0   :  { %386 = vrot.lane.b32.xlu1 %v668_v20, %s618_s30  ;;  %186 = vrot.lane.b32.xlu0 %v670_v21, %s618_s30 }
  0xd4   :  { %127 = vrot.lane.b32.xlu1 %v97_v16, %s619_s5  ;;  %125 = vrot.lane.b32.xlu0 %v662_v15, %s619_s5 }
  0xd8   :  { %332 = vrot.lane.b32.xlu1 %v311_v18, %s619_s5  ;;  %330 = vrot.lane.b32.xlu0 %v665_v19, %s619_s5 }
  0xdc   :  { %328 = vrot.lane.b32.xlu1 %v668_v20, %s619_s5  ;;  %123 = vrot.lane.b32.xlu0 %v670_v21, %s619_s5 }
  0xe0   :  { %114 = vrot.lane.b32.xlu1 %v97_v16, %s620_s6  ;;  %112 = vrot.lane.b32.xlu0 %v662_v15, %s620_s6 }
  0xe4   :  { %320 = vrot.lane.b32.xlu1 %v311_v18, %s620_s6  ;;  %318 = vrot.lane.b32.xlu0 %v665_v19, %s620_s6 }
  0xe8   :  { %316 = vrot.lane.b32.xlu1 %v668_v20, %s620_s6  ;;  %110 = vrot.lane.b32.xlu0 %v670_v21, %s620_s6 }
  0xec   :  { %179 = vrot.lane.b32.xlu1 %v97_v16, %s622_s7  ;;  %177 = vrot.lane.b32.xlu0 %v662_v15, %s622_s7 }
  0xf0   :  { %380 = vrot.lane.b32.xlu1 %v311_v18, %s622_s7  ;;  %378 = vrot.lane.b32.xlu0 %v665_v19, %s622_s7 }
  0xf4   :  { %376 = vrot.lane.b32.xlu1 %v668_v20, %s622_s7  ;;  %175 = vrot.lane.b32.xlu0 %v670_v21, %s622_s7 }
  0xf8   :  { %210 = vperm.xlu0 %542, %v78_v24  }
 0x10a   :  { %v167_v30 = vpop.permute.xlu1 %166  ;;  %v165_v31 = vpop.permute.xlu0 %164 }
 0x10b   :  { %v170_v32 = vsel %vm168_vm1, %v165_v31, %v167_v30 }
 0x10c   :  { %500 = vmatprep.subr.msk.mxu0 %vm705_vm2, %v170_v32 }
 0x10e   :  { %v369_v34 = vpop.permute.xlu1 %368  ;;  %v367_v35 = vpop.permute.xlu0 %366 }
 0x10f   :  { %v371_v36 = vsel %vm168_vm1, %v367_v35, %v369_v34 }
 0x110   :  { %513 = vmatprep.subr.msk.mxu1 %vm705_vm2, %v371_v36 }
 0x112   :  { %v365_v38 = vpop.permute.xlu1 %364  ;;  %v163_v39 = vpop.permute.xlu0 %162 }
 0x113   :  { %v169_v40 = vsel %vm168_vm1, %v163_v39, %v165_v31  ;;  %v370_v41 = vsel %vm168_vm1, %v365_v38, %v367_v35 }
 0x114   :  { %501 = vmatpush1.msk.msra.mxu0 %vm713_vm3, %v169_v40  ;;  %514 = vmatpush1.msk.msra.mxu1 %vm713_vm3, %v370_v41 }
 0x116   :  { %v202_v42 = vpop.permute.xlu1 %201  ;;  %v200_v43 = vpop.permute.xlu0 %199 }
 0x117   :  { %v205_v44 = vsel %vm203_vm4, %v200_v43, %v202_v42 }
 0x118   :  { %233 = vmatprep.subr.mxu0 %v205_v44 }
 0x11a   :  { %v401_v45 = vpop.permute.xlu1 %400  ;;  %v399_v46 = vpop.permute.xlu0 %398 }
 0x11b   :  { %v403_v47 = vsel %vm203_vm4, %v399_v46, %v401_v45 }
 0x11c   :  { %422 = vmatprep.subr.mxu1 %v403_v47 }
 0x11e   :  { %v397_v48 = vpop.permute.xlu1 %396  ;;  %v198_v49 = vpop.permute.xlu0 %197 }
 0x11f   :  { %v204_v50 = vsel %vm203_vm4, %v198_v49, %v200_v43  ;;  %v402_v51 = vsel %vm203_vm4, %v397_v48, %v399_v46 }
 0x120   :  { %234 = vmatpush1.msra.mxu0 %v204_v50  ;;  %423 = vmatpush1.msra.mxu1 %v402_v51 }
 0x122   :  { %v154_v53 = vpop.permute.xlu1 %153  ;;  %v152_v54 = vpop.permute.xlu0 %151 }
 0x123   :  { %v157_v55 = vsel %vm155_vm5, %v152_v54, %v154_v53 }
 0x124   :  { %502 = vmatprep.subr.msk.mxu0 %vm721_vm6, %v157_v55 }
 0x126   :  { %v357_v56 = vpop.permute.xlu1 %356  ;;  %v355_v57 = vpop.permute.xlu0 %354 }
 0x127   :  { %v359_v58 = vsel %vm155_vm5, %v355_v57, %v357_v56 }
 0x128   :  { %515 = vmatprep.subr.msk.mxu1 %vm721_vm6, %v359_v58 }
 0x12a   :  { %v353_v60 = vpop.permute.xlu1 %352  ;;  %v150_v61 = vpop.permute.xlu0 %149 }
 0x12b   :  { %v358_v62 = vsel %vm155_vm5, %v353_v60, %v355_v57  ;;  %v156_v63 = vsel %vm155_vm5, %v150_v61, %v152_v54 }
 0x12c   :  { %503 = vmatpush1.msk.msra.mxu0 %vm729_vm7, %v156_v63  ;;  %516 = vmatpush1.msk.msra.mxu1 %vm729_vm7, %v358_v62 }
 0x12e   :  { %v141_v0 = vpop.permute.xlu1 %140  ;;  %v139_v1 = vpop.permute.xlu0 %138 }
 0x12f   :  { %v144_v2 = vsel %vm142_vm8, %v139_v1, %v141_v0 }
 0x130   :  { %504 = vmatprep.subr.msk.mxu0 %vm705_vm2, %v144_v2 }
 0x132   :  { %v345_v3 = vpop.permute.xlu1 %344  ;;  %v343_v4 = vpop.permute.xlu0 %342 }
 0x133   :  { %v347_v5 = vsel %vm142_vm8, %v343_v4, %v345_v3 }
 0x134   :  { %517 = vmatprep.subr.msk.mxu1 %vm705_vm2, %v347_v5 }
 0x136   :  { %v341_v6 = vpop.permute.xlu1 %340  ;;  %v137_v7 = vpop.permute.xlu0 %136 }
 0x137   :  { %v346_v8 = vsel %vm142_vm8, %v341_v6, %v343_v4  ;;  %v143_v9 = vsel %vm142_vm8, %v137_v7, %v139_v1 }
 0x138   :  { %505 = vmatpush1.msk.msra.mxu0 %vm713_vm3, %v143_v9  ;;  %518 = vmatpush1.msk.msra.mxu1 %vm713_vm3, %v346_v8 }
 0x13a   :  { %v191_v10 = vpop.permute.xlu1 %190  ;;  %v189_v11 = vpop.permute.xlu0 %188 }
 0x13b   :  { %v194_v12 = vsel %vm192_vm9, %v189_v11, %v191_v10 }
 0x13c   :  { %239 = vmatprep.subr.mxu0 %v194_v12 }
 0x13e   :  { %v391_v13 = vpop.permute.xlu1 %390  ;;  %v389_v14 = vpop.permute.xlu0 %388 }
 0x13f   :  { %v393_v16 = vsel %vm192_vm9, %v389_v14, %v391_v13 }
 0x140   :  { %428 = vmatprep.subr.mxu1 %v393_v16 }
 0x142   :  { %v387_v17 = vpop.permute.xlu1 %386  ;;  %v187_v18 = vpop.permute.xlu0 %186 }
 0x143   :  { %v193_v22 = vsel %vm192_vm9, %v187_v18, %v189_v11  ;;  %v392_v23 = vsel %vm192_vm9, %v387_v17, %v389_v14 }
 0x144   :  { %240 = vmatpush1.msra.mxu0 %v193_v22  ;;  %429 = vmatpush1.msra.mxu1 %v392_v23 }
 0x146   :  { %v128_v24 = vpop.permute.xlu1 %127  ;;  %v126_v25 = vpop.permute.xlu0 %125 }
 0x147   :  { %v131_v26 = vsel %vm129_vm10, %v126_v25, %v128_v24 }
 0x148   :  { %506 = vmatprep.subr.msk.mxu0 %vm721_vm6, %v131_v26 }
 0x14a   :  { %v333_v27 = vpop.permute.xlu1 %332  ;;  %v331_v28 = vpop.permute.xlu0 %330 }
 0x14b   :  { %v335_v30 = vsel %vm129_vm10, %v331_v28, %v333_v27 }
 0x14c   :  { %519 = vmatprep.subr.msk.mxu1 %vm721_vm6, %v335_v30 }
 0x14e   :  { %v329_v31 = vpop.permute.xlu1 %328  ;;  %v124_v32 = vpop.permute.xlu0 %123 }
 0x14f   :  { %v334_v33 = vsel %vm129_vm10, %v329_v31, %v331_v28  ;;  %v130_v34 = vsel %vm129_vm10, %v124_v32, %v126_v25 }
 0x150   :  { %507 = vmatpush1.msk.msra.mxu0 %vm729_vm7, %v130_v34  ;;  %520 = vmatpush1.msk.msra.mxu1 %vm729_vm7, %v334_v33 }
 0x152   :  { %v115_v35 = vpop.permute.xlu1 %114  ;;  %v113_v36 = vpop.permute.xlu0 %112 }
 0x153   :  { %v118_v38 = vsel %vm116_vm11, %v113_v36, %v115_v35 }
 0x154   :  { %508 = vmatprep.subr.msk.mxu0 %vm705_vm2, %v118_v38 }
 0x156   :  { %v321_v39 = vpop.permute.xlu1 %320  ;;  %v319_v40 = vpop.permute.xlu0 %318 }
 0x157   :  { %v323_v41 = vsel %vm116_vm11, %v319_v40, %v321_v39 }
 0x158   :  { %521 = vmatprep.subr.msk.mxu1 %vm705_vm2, %v323_v41 }
 0x15a   :  { %v317_v42 = vpop.permute.xlu1 %316  ;;  %v111_v43 = vpop.permute.xlu0 %110 }
 0x15b   :  { %v322_v44 = vsel %vm116_vm11, %v317_v42, %v319_v40  ;;  %v117_v45 = vsel %vm116_vm11, %v111_v43, %v113_v36 }
 0x15c   :  { %509 = vmatpush1.msk.msra.mxu0 %vm713_vm3, %v117_v45  ;;  %522 = vmatpush1.msk.msra.mxu1 %vm713_vm3, %v322_v44 }
 0x15e   :  { %v180_v46 = vpop.permute.xlu1 %179  ;;  %v178_v47 = vpop.permute.xlu0 %177 }
 0x15f   :  { %v183_v48 = vsel %vm181_vm12, %v178_v47, %v180_v46 }
 0x160   :  { %245 = vmatprep.subr.mxu0 %v183_v48 }
 0x162   :  { %v381_v49 = vpop.permute.xlu1 %380  ;;  %v379_v50 = vpop.permute.xlu0 %378 }
 0x163   :  { %v383_v51 = vsel %vm181_vm12, %v379_v50, %v381_v49 }
 0x164   :  { %434 = vmatprep.subr.mxu1 %v383_v51 }
 0x166   :  { %v377_v29 = vpop.permute.xlu1 %376  ;;  %v176_v53 = vpop.permute.xlu0 %175 }
 0x167   :  { %v182_v54 = vsel %vm181_vm12, %v176_v53, %v178_v47  ;;  %v382_v55 = vsel %vm181_vm12, %v377_v29, %v379_v50 }
 0x168   :  { %246 = vmatpush1.msra.mxu0 %v182_v54  ;;  %435 = vmatpush1.msra.mxu1 %v382_v55 }
 0x169   :  { %510 = vmatprep.subr.msk.mxu0 %vm721_vm6, %v662_v15  ;;  %523 = vmatprep.subr.msk.mxu1 %vm721_vm6, %v665_v19 }
 0x16a   :  { %511 = vmatpush1.msk.msra.mxu0 %vm729_vm7, %v670_v21  ;;  %524 = vmatpush1.msk.msra.mxu1 %vm729_vm7, %v668_v20 }
 0x16b   :  { %512 = vmatmul.mubr.msk.f32.vlgmr.msra.gmra.mxu0 %vm213_vm13, %v77_v37  ;;  %525 = vmatmul.mubr.msk.f32.vlgmr.msra.gmra.mxu1 %vm213_vm13, %v77_v37 }
 0x173   :  { %v211_v56 = vpop.permute.xlu0 %210 }
 0x22b   :  { %v283_v57 = vpop.f32.mrf.mxu0  ;;  %v472_v58 = vpop.f32.mrf.mxu1 }
 0x22c   :  { %v284_v60 = vadd.f32 %v283_v57, %v211_v56  ;;  %v473_v61 = vadd.f32 %v472_v58, %v211_v56 }
 0x22d   :  { %v285_v15 = vpop.f32.mrf.mxu0  ;;  %v474_v62 = vpop.f32.mrf.mxu1 }
 0x22e   :  { %v288_v19 = vmax.f32 %v284_v60, 0.0  ;;  %v477_v52 = vmax.f32 %v473_v61, 0.0  ;;  %v286_v63 = vadd.f32 %v285_v15, %v211_v56  ;;  %v475_v0 = vadd.f32 %v474_v62, %v211_v56 }
 0x230   :  { %290 = vst [vmem:[#allocation7] sm:$0xff] %v288_v19  ;;  %480 = vst [vmem:[#allocation7 + $0x10] sm:$0xff] %v477_v52  ;;  %v289_v21 = vmax.f32 %v286_v63, 0.0  ;;  %v478_v59 = vmax.f32 %v475_v0, 0.0 }
 0x232   :  { %291 = vst [vmem:[#allocation7 + $0x8] sm:$0xff] %v289_v21  ;;  %481 = vst [vmem:[#allocation7 + $0x18] sm:$0xff] %v478_v59 }
 0x233   :  { %594 = shalt.err (!%p591_p0)
}
 0x234   :  { %493 = dma.vmem_to_hbm [thread:$0]  %s488_s11, 512, %s786_s4, [#allocation4], %s610_s18, %s610_s18, %s611_s19  }
 0x235   :  { %607 = dma.done.wait [#allocation4], 512  }
 0x236   :  { %608 = vsyncadd [#allocation4], 4294966784 }
 0x237   :  { %497 = vsyncpa [#allocation3], 1 }
 0x238   :  { %498 = vsyncpa [#allocation6], 1 }
 0x239   :  { %499 = vsyncpa [#allocation4], 1 }

</bundles_post_ra>
